<compile_context>
chip_gen: v5e
topology: v5e:2x2
jax: 0.10.0
libtpu: 0.0.40
codegen_flags: <defaults>
</compile_context>

<pallas_src>
import numpy as np
import jax
import jax.numpy as jnp
from jax.experimental import pallas as pl
from jax.experimental.pallas import tpu as pltpu

# ----------------------------- configuration --------------------------------
IMAGE_MODALITY_INDEX = 1

B        = 2            # batch
IMG_H    = 32           # default_image_size
IMG_W    = 32
C_IN     = 3
PATCH    = 8            # vqgan patch_size (downsample factor)
GRID_H   = IMG_H // PATCH
GRID_W   = IMG_W // PATCH
SEQ_LEN  = GRID_H * GRID_W          # 16 image tokens per image
Z_DIM    = 16           # VQGAN latent dim
K_CODES  = 64           # VQGAN codebook size
K_PAD    = 128          # codebook padded to a full lane row
EMB_DIM  = 32           # cfg.emb_dim
VOCAB    = 128          # shared_embed vocab (>= K_CODES + 2), == lane width
PATCH_DIM = C_IN * PATCH * PATCH    # 192
IMAGE_POS_EMB = "llama_rope"        # -> modality_embedding is used
DALLE_ATTN_MASK = True


# --------------------- attention-pattern masks (init buffers) ---------------
def _init_mask(height, width):
    n = height * width
    return np.tril(np.ones((n, n), dtype=np.float32))


def get_row_mask(height, width):
    mask = _init_mask(height, width)
    step = width + 1
    for col in range(mask.shape[1]):
        mask[col + step:, col] = 0.0
    return mask


def get_col_mask(height, width):
    mask = _init_mask(height, width)
    step = width - 1
    for col in range(mask.shape[1]):
        for i in range(1, mask.shape[0], step + 1):
            mask[col + i:col + i + step, col] = 0.0
    return mask


def get_conv_mask(height, width, kernel=11):
    mask = _init_mask(height, width)
    shift = kernel // 2
    for pos in range(mask.shape[1]):
        mask[pos + 1:, pos] = 0.0
        row = pos // width
        col = pos % width
        for r in range(-shift, shift + 1):
            for c in range(-shift, shift + 1):
                c_abs = max(min(c + col, width - 1), 0)
                r_abs = max(min(r + row, height - 1), 0)
                cell_id = r_abs * width + c_abs
                if cell_id > pos:
                    mask[cell_id, pos] = 1.0
    return mask


def build_attn_mask():
    row_mask = get_row_mask(GRID_H, GRID_W)
    col_mask = get_col_mask(GRID_H, GRID_W)
    conv_mask = get_conv_mask(GRID_H, GRID_W)
    full_mask = _init_mask(GRID_H, GRID_W)
    return jnp.asarray(np.stack([row_mask, col_mask, conv_mask, full_mask], axis=0))


# ----------------------- positional embedding cache -------------------------
def build_pos_emb_cache():
    # TODO(synk): layers.get_2d_position_embedding ('llama_rope') not provided;
    # deterministic 2-D sinusoidal embedding of shape (SEQ_LEN, EMB_DIM) used instead.
    pos = np.arange(SEQ_LEN, dtype=np.float32)[:, None]
    dim = np.arange(EMB_DIM // 2, dtype=np.float32)[None, :]
    inv_freq = 1.0 / (10000.0 ** (2.0 * dim / EMB_DIM))
    ang = pos * inv_freq
    return jnp.asarray(
        np.concatenate([np.sin(ang), np.cos(ang)], axis=-1).astype(np.float32))


# ------------------------------ fused Pallas kernel --------------------------
def fused_encode_embed_kernel(patches_ref, wf_ref, dconst_ref, emb_ref, mod_ref,
                              tok_ref, x_ref):
    """One grid step == one image (SEQ_LEN tokens).

    patches_ref : (1, L, PATCH_DIM)  bf16   flattened image patches
    wf_ref      : (PATCH_DIM, K_PAD) bf16   enc_w @ codebook (K padded, pads = 0)
    dconst_ref  : (1, K_PAD)         f32    |e_k|^2 - 2*enc_b@codebook (pads = +1e30)
    emb_ref     : (VOCAB, EMB_DIM)   bf16   shared embedding table
    mod_ref     : (1, EMB_DIM)       f32    modality embedding
    tok_ref     : (1, 1, L)          int32  target tokens (codes + 2), lane row
    x_ref       : (1, L, EMB_DIM)    f32    embedded (BOS-shifted) inputs + modality
    """
    L = SEQ_LEN
    patches = patches_ref[0]                                       # (L, P) bf16

    # --- nearest codebook entry (z_sq term dropped: constant per row over K) ---
    cross = jnp.dot(patches, wf_ref[...],
                    preferred_element_type=jnp.float32)            # (L, K_PAD) f32
    dist = dconst_ref[...] - 2.0 * cross                           # (L, K_PAD) f32
    min_d = jnp.min(dist, axis=-1, keepdims=True)                  # (L, 1)
    klane = jax.lax.broadcasted_iota(jnp.int32, dist.shape, 1)
    codes = jnp.min(jnp.where(dist <= min_d, klane, K_PAD),
                    axis=-1, keepdims=True)                        # (L, 1) lowest-index argmin
    target = codes + 2                                             # (L, 1) int32

    # --- shared_embed(target tokens) via one-hot @ table on the MXU ---
    vlane = jax.lax.broadcasted_iota(jnp.int32, (L, VOCAB), 1)
    onehot_tgt = (vlane == target).astype(jnp.float32).astype(emb_ref.dtype)  # (L, V) bf16
    x_tgt = jnp.dot(onehot_tgt, emb_ref[...],
                    preferred_element_type=jnp.float32)            # (L, E) exact row selects

    # --- teacher-forcing shift: input[t] = target[t-1], input[0] = BOS (token 0) ---
    r = jax.lax.broadcasted_iota(jnp.int32, (L, L), 0)
    c = jax.lax.broadcasted_iota(jnp.int32, (L, L), 1)
    shift_mat = (r == c + 1).astype(jnp.float32).astype(emb_ref.dtype)  # subdiagonal
    x_in = jnp.dot(shift_mat, x_tgt.astype(emb_ref.dtype),
                   preferred_element_type=jnp.float32)             # (L, E) rows shifted down
    row_e = jax.lax.broadcasted_iota(jnp.int32, (L, EMB_DIM), 0)
    bos = emb_ref[0:1, :].astype(jnp.float32)                      # (1, E) embedding of token 0
    x_in = jnp.where(row_e == 0, bos, x_in)
    x_ref[0] = (x_in + mod_ref[...]).astype(x_ref.dtype)

    # --- emit target tokens as a lane row (column -> row via masked sublane reduce) ---
    trow = jnp.sum(jnp.where(r == c, jnp.broadcast_to(target, (L, L)), 0),
                   axis=0, keepdims=True)                          # (1, L) int32
    tok_ref[0] = trow


def vqgan_tokens_and_embed(patches, w_fused, dist_const, emb_table, modality_emb):
    """patches (B, L, PATCH_DIM) bf16 -> (target_tokens (B,1,L) int32, x (B,L,E) f32)."""
    bs = patches.shape[0]
    return pl.pallas_call(
        fused_encode_embed_kernel,
        grid=(bs,),
        in_specs=[
            pl.BlockSpec((1, SEQ_LEN, PATCH_DIM), lambda i: (i, 0, 0)),
            pl.BlockSpec((PATCH_DIM, K_PAD),      lambda i: (0, 0)),
            pl.BlockSpec((1, K_PAD),              lambda i: (0, 0)),
            pl.BlockSpec((VOCAB, EMB_DIM),        lambda i: (0, 0)),
            pl.BlockSpec((1, EMB_DIM),            lambda i: (0, 0)),
        ],
        out_specs=(
            pl.BlockSpec((1, 1, SEQ_LEN),         lambda i: (i, 0, 0)),
            pl.BlockSpec((1, SEQ_LEN, EMB_DIM),   lambda i: (i, 0, 0)),
        ),
        out_shape=(
            jax.ShapeDtypeStruct((bs, 1, SEQ_LEN), jnp.int32),
            jax.ShapeDtypeStruct((bs, SEQ_LEN, EMB_DIM), jnp.float32),
        ),
        compiler_params=pltpu.CompilerParams(dimension_semantics=("parallel",)),
    )(patches, w_fused, dist_const, emb_table, modality_emb)


# ------------------------------ module wrapper --------------------------------
class ImageVQGANPallas:
    def __init__(self, key):
        k0, k1, k2, k3, k4 = jax.random.split(key, 5)
        # TODO(synk): full VQGAN conv encoder (ResNet blocks + attn) is not in the
        # provided source; approximated by a single patch-projection + codebook VQ.
        enc_w = jax.random.normal(k0, (PATCH_DIM, Z_DIM), jnp.float32) * 0.02
        enc_b = jax.random.normal(k1, (1, Z_DIM), jnp.float32) * 0.02
        codebook_t = jax.random.normal(k2, (Z_DIM, K_CODES), jnp.float32)     # (Z, K)
        emb_table = jax.random.normal(k3, (VOCAB, EMB_DIM), jnp.float32) * 0.02
        self.modality_embedding = jax.random.normal(k4, (1, EMB_DIM), jnp.float32) * 0.02

        # ---- init-time algebraic fold (z_sq is row-constant -> irrelevant to argmin) ----
        w_fused = enc_w @ codebook_t                                          # (P, K)
        b_cb = enc_b @ codebook_t                                             # (1, K)
        e_sq = jnp.sum(codebook_t * codebook_t, axis=0, keepdims=True)        # (1, K)
        dist_const = e_sq - 2.0 * b_cb                                        # (1, K)
        # pad K -> 128 lanes: zero weight columns, +1e30 distance constant
        self.w_fused = (jnp.zeros((PATCH_DIM, K_PAD), jnp.float32)
                        .at[:, :K_CODES].set(w_fused).astype(jnp.bfloat16))
        self.dist_const = (jnp.full((1, K_PAD), 1e30, jnp.float32)
                           .at[:, :K_CODES].set(dist_const))
        self.emb_bf16 = emb_table.astype(jnp.bfloat16)

        self.attn_mask = build_attn_mask()             # (4, L, L)
        self.pos_emb_cache = build_pos_emb_cache()     # (L, EMB_DIM)

    # NHWC image -> (B, L, PATCH_DIM) bf16 patches, flattened in (C, ph, pw) order
    def _patchify(self, image):
        bs = image.shape[0]
        x = jnp.transpose(image, (0, 3, 1, 2))                      # NCHW
        x = x.reshape(bs, C_IN, GRID_H, PATCH, GRID_W, PATCH)
        x = jnp.transpose(x, (0, 2, 4, 1, 3, 5))
        return x.reshape(bs, SEQ_LEN, PATCH_DIM).astype(jnp.bfloat16)

    # --- target_image_to_seq + shared_embed fused (tokens never leave VMEM) ---
    def encode_and_embed(self, image):
        bs = image.shape[0]
        patches = self._patchify(image)
        tok_row, x = vqgan_tokens_and_embed(patches, self.w_fused, self.dist_const,
                                            self.emb_bf16, self.modality_embedding)
        target_tokens = jax.lax.stop_gradient(tok_row.reshape(bs, SEQ_LEN))
        # TODO(synk): input_tokens are consumed inside the fused kernel and not
        # materialized separately (the original module only uses them for shared_embed).
        return target_tokens, x

    # --- get_target_sequence ---
    def get_target_sequence(self, x, mask=None, target_tokens=None,
                            task_mask=None, loss_mask=None, segment_ids=None):
        bs, seq, _ = x.shape
        pos_emb = jnp.broadcast_to(self.pos_emb_cache[:seq][None], (bs, seq, EMB_DIM))
        if mask is None:
            mask = jnp.ones((bs, seq), jnp.int32)
        # NOTE: at real sequence lengths return the shared (4, L, L) mask and let the
        # consumer broadcast lazily; kept batch-expanded here to match torch .expand().
        if DALLE_ATTN_MASK:
            attn_pattern_mask = jnp.broadcast_to(self.attn_mask[None],
                                                 (bs, 4, seq, seq))
        else:
            attn_pattern_mask = jnp.broadcast_to(self.attn_mask[None, -1][:, None],
                                                 (bs, 4, seq, seq))
        # TODO(synk): dynamic_unk_mask branch omitted (task_mask=None in this setup).
        modality_id = jnp.array(IMAGE_MODALITY_INDEX, jnp.int32)
        return {
            "input_embedding": x,
            "position_embed": pos_emb,
            "modality_id": modality_id,
            "mask": mask,
            "attn_pattern_mask": attn_pattern_mask,
            "subsegments": segment_ids,
            "target_tokens": target_tokens,
            "loss_mask": loss_mask,
        }

    # --- forward ---
    def __call__(self, image, mask=None, loss_mask=None, task_mask=None,
                 segment_ids=None):
        target_tokens, x = self.encode_and_embed(image)
        return self.get_target_sequence(x, mask, target_tokens,
                                        task_mask, loss_mask, segment_ids)


# ----------------------------------- main ------------------------------------
if __name__ == "__main__":
    key = jax.random.PRNGKey(0)
    k_img, k_params = jax.random.split(key)
    image = jax.random.uniform(k_img, (B, IMG_H, IMG_W, C_IN), jnp.float32)

    model = ImageVQGANPallas(k_params)
    out = model(image)
    out = jax.block_until_ready(out)

    # shape / dtype / range checks
    assert out["input_embedding"].shape == (B, SEQ_LEN, EMB_DIM)
    assert out["input_embedding"].dtype == jnp.float32
    assert out["position_embed"].shape == (B, SEQ_LEN, EMB_DIM)
    assert out["attn_pattern_mask"].shape == (B, 4, SEQ_LEN, SEQ_LEN)
    assert out["target_tokens"].shape == (B, SEQ_LEN)
    assert out["target_tokens"].dtype == jnp.int32
    assert int(out["target_tokens"].min()) >= 2
    assert int(out["target_tokens"].max()) <= K_CODES + 1
    assert bool(jnp.all(jnp.isfinite(out["input_embedding"])))

    # reference checks (plain JAX, same folded bf16 weights)
    patches = model._patchify(image).astype(jnp.float32)                    # (B, L, P)
    ref_dist = model.dist_const[None] - 2.0 * jnp.einsum(
        "blp,pk->blk", patches, model.w_fused.astype(jnp.float32))
    ref_tokens = jnp.argmin(ref_dist, axis=-1).astype(jnp.int32) + 2
    agree = float(jnp.mean((ref_tokens == out["target_tokens"]).astype(jnp.float32)))
    assert agree >= 0.9, f"token agreement too low: {agree}"

    tgt = out["target_tokens"]
    inp = jnp.concatenate([jnp.zeros((B, 1), jnp.int32), tgt[:, :-1]], axis=1)
    ref_x = model.emb_bf16[inp].astype(jnp.float32) + model.modality_embedding
    assert bool(jnp.allclose(out["input_embedding"], ref_x, atol=1e-6, rtol=1e-6))

    print("KERNEL_OK")
</pallas_src>

<mosaic_0001>
module attributes {stable_mosaic.version = 11 : i64} {
  func.func @fused_encode_embed_kernel(%arg0: i32, %arg1: memref<1x16x192xbf16, #tpu.memory_space<vmem>>, %arg2: memref<192x128xbf16, #tpu.memory_space<vmem>>, %arg3: memref<1x128xf32, #tpu.memory_space<vmem>>, %arg4: memref<128x32xbf16, #tpu.memory_space<vmem>>, %arg5: memref<1x32xf32, #tpu.memory_space<vmem>>, %arg6: memref<1x1x16xi32, #tpu.memory_space<vmem>>, %arg7: memref<1x16x32xf32, #tpu.memory_space<vmem>>) attributes {dimension_semantics = [#tpu.dimension_semantics<parallel>], iteration_bounds = array<i64: 2>, scalar_prefetch = 0 : i64, scratch_operands = 0 : i64, tpu.core_type = #tpu.core_type<tc>, window_params = [{transform_indices = @transform_0, window_bounds = array<i64: 1, 16, 192>}, {pipeline_mode = #tpu.pipeline_mode<synchronous>, transform_indices = @transform_1, window_bounds = array<i64: 192, 128>}, {pipeline_mode = #tpu.pipeline_mode<synchronous>, transform_indices = @transform_2, window_bounds = array<i64: 1, 128>}, {pipeline_mode = #tpu.pipeline_mode<synchronous>, transform_indices = @transform_3, window_bounds = array<i64: 128, 32>}, {pipeline_mode = #tpu.pipeline_mode<synchronous>, transform_indices = @transform_4, window_bounds = array<i64: 1, 32>}, {transform_indices = @transform_5, window_bounds = array<i64: 1, 1, 16>}, {transform_indices = @transform_6, window_bounds = array<i64: 1, 16, 32>}]} {
    %c0 = arith.constant 0 : index
    %c0_0 = arith.constant 0 : index
    %c0_1 = arith.constant 0 : index
    %0 = vector.load %arg1[%c0, %c0_0, %c0_1] : memref<1x16x192xbf16, #tpu.memory_space<vmem>>, vector<1x16x192xbf16>
    %1 = vector.shape_cast %0 : vector<1x16x192xbf16> to vector<16x192xbf16>
    %c0_2 = arith.constant 0 : index
    %c0_3 = arith.constant 0 : index
    %2 = vector.load %arg2[%c0_2, %c0_3] : memref<192x128xbf16, #tpu.memory_space<vmem>>, vector<192x128xbf16>
    %cst = arith.constant dense<0.000000e+00> : vector<16x128xf32>
    %3 = tpu.matmul %1, %2, %cst {dimension_numbers = #tpu.dot_dimension_numbers<[1], [0], [0], [1], [0, 0, 1, 1], [], []>} : vector<16x192xbf16>, vector<192x128xbf16>, vector<16x128xf32> -> vector<16x128xf32>
    %c0_4 = arith.constant 0 : index
    %c0_5 = arith.constant 0 : index
    %4 = vector.load %arg3[%c0_4, %c0_5] : memref<1x128xf32, #tpu.memory_space<vmem>>, vector<1x128xf32>
    %cst_6 = arith.constant 2.000000e+00 : f32
    %5 = vector.broadcast %cst_6 : f32 to vector<16x128xf32>
    %6 = arith.mulf %5, %3 : vector<16x128xf32>
    %7 = vector.broadcast %4 : vector<1x128xf32> to vector<16x128xf32>
    %8 = arith.subf %7, %6 : vector<16x128xf32>
    %cst_7 = arith.constant dense<0x7F800000> : vector<16xf32>
    %9 = vector.multi_reduction <minimumf>, %8, %cst_7 [1] : vector<16x128xf32> to vector<16xf32>
    %10 = vector.shape_cast %9 : vector<16xf32> to vector<16x1xf32>
    %11 = tpu.iota {dimensions = array<i32: 1>} : vector<16x128xi32>
    %12 = vector.broadcast %10 : vector<16x1xf32> to vector<16x128xf32>
    %13 = arith.cmpf ole, %8, %12 : vector<16x128xf32>
    %c128_i32 = arith.constant 128 : i32
    %14 = vector.broadcast %c128_i32 : i32 to vector<16x128xi32>
    %15 = arith.select %13, %11, %14 : vector<16x128xi1>, vector<16x128xi32>
    %cst_8 = arith.constant dense<2147483647> : vector<16xi32>
    %16 = vector.multi_reduction <minsi>, %15, %cst_8 [1] : vector<16x128xi32> to vector<16xi32>
    %17 = vector.shape_cast %16 : vector<16xi32> to vector<16x1xi32>
    %c2_i32 = arith.constant 2 : i32
    %18 = vector.broadcast %c2_i32 : i32 to vector<16x1xi32>
    %19 = arith.addi %17, %18 : vector<16x1xi32>
    %20 = tpu.iota {dimensions = array<i32: 1>} : vector<16x128xi32>
    %21 = vector.broadcast %19 : vector<16x1xi32> to vector<16x128xi32>
    %22 = arith.cmpi eq, %20, %21 : vector<16x128xi32>
    %23 = arith.extui %22 : vector<16x128xi1> to vector<16x128xi32>
    %24 = arith.sitofp %23 : vector<16x128xi32> to vector<16x128xf32>
    %25 = arith.truncf %24 : vector<16x128xf32> to vector<16x128xbf16>
    %c0_9 = arith.constant 0 : index
    %c0_10 = arith.constant 0 : index
    %26 = vector.load %arg4[%c0_9, %c0_10] : memref<128x32xbf16, #tpu.memory_space<vmem>>, vector<128x32xbf16>
    %cst_11 = arith.constant dense<0.000000e+00> : vector<16x32xf32>
    %27 = tpu.matmul %25, %26, %cst_11 {dimension_numbers = #tpu.dot_dimension_numbers<[1], [0], [0], [1], [0, 0, 1, 1], [], []>} : vector<16x128xbf16>, vector<128x32xbf16>, vector<16x32xf32> -> vector<16x32xf32>
    %28 = tpu.iota {dimensions = array<i32: 0>} : vector<16x16xi32>
    %29 = tpu.iota {dimensions = array<i32: 1>} : vector<16x16xi32>
    %c1_i32 = arith.constant 1 : i32
    %30 = vector.broadcast %c1_i32 : i32 to vector<16x16xi32>
    %31 = arith.addi %29, %30 : vector<16x16xi32>
    %32 = arith.cmpi eq, %28, %31 : vector<16x16xi32>
    %33 = arith.extui %32 : vector<16x16xi1> to vector<16x16xi32>
    %34 = arith.sitofp %33 : vector<16x16xi32> to vector<16x16xf32>
    %35 = arith.truncf %34 : vector<16x16xf32> to vector<16x16xbf16>
    %36 = arith.truncf %27 : vector<16x32xf32> to vector<16x32xbf16>
    %cst_12 = arith.constant dense<0.000000e+00> : vector<16x32xf32>
    %37 = tpu.matmul %35, %36, %cst_12 {dimension_numbers = #tpu.dot_dimension_numbers<[1], [0], [0], [1], [0, 0, 1, 1], [], []>} : vector<16x16xbf16>, vector<16x32xbf16>, vector<16x32xf32> -> vector<16x32xf32>
    %38 = tpu.iota {dimensions = array<i32: 0>} : vector<16x32xi32>
    %c0_13 = arith.constant 0 : index
    %c0_14 = arith.constant 0 : index
    %39 = vector.load %arg4[%c0_13, %c0_14] : memref<128x32xbf16, #tpu.memory_space<vmem>>, vector<1x32xbf16>
    %40 = arith.extf %39 : vector<1x32xbf16> to vector<1x32xf32>
    %c0_i32 = arith.constant 0 : i32
    %41 = vector.broadcast %c0_i32 : i32 to vector<16x32xi32>
    %42 = arith.cmpi eq, %38, %41 : vector<16x32xi32>
    %43 = vector.shape_cast %40 : vector<1x32xf32> to vector<1x32xf32>
    %44 = vector.broadcast %43 : vector<1x32xf32> to vector<16x32xf32>
    %45 = arith.select %42, %44, %37 : vector<16x32xi1>, vector<16x32xf32>
    %c0_15 = arith.constant 0 : index
    %c0_16 = arith.constant 0 : index
    %46 = vector.load %arg5[%c0_15, %c0_16] : memref<1x32xf32, #tpu.memory_space<vmem>>, vector<1x32xf32>
    %47 = vector.broadcast %46 : vector<1x32xf32> to vector<16x32xf32>
    %48 = arith.addf %45, %47 : vector<16x32xf32>
    %c0_17 = arith.constant 0 : index
    %c0_18 = arith.constant 0 : index
    %c0_19 = arith.constant 0 : index
    %49 = vector.load %arg7[%c0_17, %c0_18, %c0_19] : memref<1x16x32xf32, #tpu.memory_space<vmem>>, vector<1x16x32xf32>
    %50 = vector.shape_cast %49 : vector<1x16x32xf32> to vector<16x32xf32>
    %51 = vector.shape_cast %48 : vector<16x32xf32> to vector<1x16x32xf32>
    tpu.vector_store %arg7[%c0_17, %c0_18, %c0_19], %51 {strides = array<i32>} : memref<1x16x32xf32, #tpu.memory_space<vmem>>, vector<1x16x32xf32>,
    %52 = arith.cmpi eq, %28, %29 : vector<16x16xi32>
    %53 = vector.shape_cast %19 : vector<16x1xi32> to vector<16x1xi32>
    %54 = vector.broadcast %53 : vector<16x1xi32> to vector<16x16xi32>
    %c0_i32_20 = arith.constant 0 : i32
    %55 = vector.broadcast %c0_i32_20 : i32 to vector<16x16xi32>
    %56 = arith.select %52, %54, %55 : vector<16x16xi1>, vector<16x16xi32>
    %cst_21 = arith.constant dense<0> : vector<16xi32>
    %57 = vector.multi_reduction <add>, %56, %cst_21 [0] : vector<16x16xi32> to vector<16xi32>
    %58 = vector.shape_cast %57 : vector<16xi32> to vector<1x16xi32>
    %c0_22 = arith.constant 0 : index
    %c0_23 = arith.constant 0 : index
    %c0_24 = arith.constant 0 : index
    %59 = vector.load %arg6[%c0_22, %c0_23, %c0_24] : memref<1x1x16xi32, #tpu.memory_space<vmem>>, vector<1x1x16xi32>
    %60 = vector.shape_cast %59 : vector<1x1x16xi32> to vector<1x16xi32>
    %61 = vector.shape_cast %58 : vector<1x16xi32> to vector<1x1x16xi32>
    tpu.vector_store %arg6[%c0_22, %c0_23, %c0_24], %61 {strides = array<i32>} : memref<1x1x16xi32, #tpu.memory_space<vmem>>, vector<1x1x16xi32>,
    return
  }
  func.func @transform_0(%arg0: i32) -> (i32, i32, i32) {
    %c0_i32 = arith.constant 0 : i32
    %c0_i32_0 = arith.constant 0 : i32
    %c0_i32_1 = arith.constant 0 : i32
    return %arg0, %c0_i32, %c0_i32_0 : i32, i32, i32
  }
  func.func @transform_1(%arg0: i32) -> (i32, i32) {
    %c0_i32 = arith.constant 0 : i32
    %c0_i32_0 = arith.constant 0 : i32
    %c0_i32_1 = arith.constant 0 : i32
    return %c0_i32, %c0_i32_0 : i32, i32
  }
  func.func @transform_2(%arg0: i32) -> (i32, i32) {
    %c0_i32 = arith.constant 0 : i32
    %c0_i32_0 = arith.constant 0 : i32
    %c0_i32_1 = arith.constant 0 : i32
    return %c0_i32, %c0_i32_0 : i32, i32
  }
  func.func @transform_3(%arg0: i32) -> (i32, i32) {
    %c0_i32 = arith.constant 0 : i32
    %c0_i32_0 = arith.constant 0 : i32
    %c0_i32_1 = arith.constant 0 : i32
    return %c0_i32, %c0_i32_0 : i32, i32
  }
  func.func @transform_4(%arg0: i32) -> (i32, i32) {
    %c0_i32 = arith.constant 0 : i32
    %c0_i32_0 = arith.constant 0 : i32
    %c0_i32_1 = arith.constant 0 : i32
    return %c0_i32, %c0_i32_0 : i32, i32
  }
  func.func @transform_5(%arg0: i32) -> (i32, i32, i32) {
    %c0_i32 = arith.constant 0 : i32
    %c0_i32_0 = arith.constant 0 : i32
    %c0_i32_1 = arith.constant 0 : i32
    return %arg0, %c0_i32, %c0_i32_0 : i32, i32, i32
  }
  func.func @transform_6(%arg0: i32) -> (i32, i32, i32) {
    %c0_i32 = arith.constant 0 : i32
    %c0_i32_0 = arith.constant 0 : i32
    %c0_i32_1 = arith.constant 0 : i32
    return %arg0, %c0_i32, %c0_i32_0 : i32, i32, i32
  }
}

</mosaic_0001>

<bundles_post_ra>
// kernel: tpu_custom_call.1
= control target key start
LH: loop header
LB: loop body
LE: loop exit
PB: predicated region body
PF: predicated region fallthrough
CT: control target
= control target key end

     0   :  { %12 = vsyncpa [#allocation3], 0  ;;  %s1281_s0 = inlined_call_operand.vmem [shape: bf16[2,16,192], index: 0, kind: input, shape index: {}]   ;;  %s1282_s1 = inlined_call_operand.hbm [shape: bf16[192,128], index: 1, kind: input, shape index: {}]   ;;  %s1283_s2 = inlined_call_operand.vmem [shape: f32[1,128], index: 2, kind: input, shape index: {}]   ;;  %s1284_s3 = inlined_call_operand.vmem [shape: bf16[128,32], index: 3, kind: input, shape index: {}]   ;;  %s1285_s4 = inlined_call_operand.vmem [shape: f32[1,32], index: 4, kind: input, shape index: {}]   ;;  %s1286_s5 = inlined_call_operand.hbm [shape: s32[2,1,16], index: 5, kind: output, shape index: {0}]   ;;  %s1287_s6 = inlined_call_operand.hbm [shape: f32[2,16,32], index: 6, kind: output, shape index: {1}]  }
   0x1   :  { %13 = vsyncpa [#allocation4], 0 }
   0x2   :  { %15 = vsyncpa [#allocation4 + $0x1], 0 }
   0x3   :  { %16 = vsyncpa [#allocation7], 0 }
   0x4   :  { %18 = vsyncpa [#allocation7 + $0x1], 0  ;;  %s1115_s21 = smov 0   ;;  %s1117_s22 = smov 0  }
   0x5   :  { %s1119_s23 = smov 0   ;;  %s1121_s24 = smov 0  }
   0x6 LB: > { %s1136_s25 = sadd.s32 4294967295, %s1071_s24   ;;  %s746_s26 = sadd.s32 4294967294, %s1071_s24   ;;  %s1071_s24 = sphi %s1121_s24, %s1293_s24   ;;  %s1067_s23 = sphi %s1119_s23, %s1292_s23   ;;  %s1063_s22 = sphi %s1117_s22, %s1291_s22   ;;  %s1059_s21 = sphi %s1115_s21, %s1290_s21  }
   0x7   : > { %s1140_s27 = sadd.s32 1, %s1071_s24   ;;  %s141_s28 = sadd.s32 1, %s1067_s23 }
   0x8   : > { %s138_s29 = ssub.s32 %s1071_s24, %s1140_s27  ;;  %p151_p0 = scmp.ne.s32.totalorder %s1067_s23, %s1063_s22 }
   0x9   : > { %p139_p1 = scmp.eq.s32.totalorder %s138_s29, 0  ;;  %p152_p2 = scmp.eq.s32.totalorder %s1136_s25, 1 }
   0xa   : > { %p157_p3 = scmp.ne.s32.totalorder %s1063_s22, %s1059_s21  ;;  %p158_p4 = scmp.eq.s32.totalorder %s746_s26, 1 }
   0xb   : > { %s1151_s30 = scalar_select %p139_p1, %s1067_s23, %s141_s28  }
   0xc   : > { %p1153_p5 = por %p152_p2, %p151_p0  ;;  %p1157_p6 = por %p158_p4, %p157_p3 }
   0xd   : > { %p747_p7 = scmp.ge.s32.totalorder %s1071_s24, 1  ;;  %p191_p8 = scmp.lt.s32.totalorder %s1071_s24, 3 }
   0xe   : > { %p899_p9 = scmp.eq.s32.totalorder %s1136_s25, 0  ;;  %s202_s11 = sshll.u32 %s1282_s1, 4  ;;  %s203_s11 = int_to_ptr.hbm [resolvable:$true] %s202_s11 }
   0xf   : > { %p192_p10 = pnand %p747_p7, %p191_p8  ;;  %s1073_s12 = smov [#allocation2]  }
  0x10   : > { %s204_s13 = sshll.u32 %s1073_s12, 4  ;;  %s1074_s14 = smov 64   ;;  %s205_s13 = int_to_ptr.vmem [resolvable:$true] %s204_s13 }
  0x11   : > { %p888_p11 = pneg %p192_p10  ;;  %s1075_s15 = smov 4  }
  0x12   : > { %237 = sbr.rel (%p192_p10) target bundleno = 851 (0x353), region = 40 }
  0x13   : > { %p889_p12 = pnand %p899_p9, %p888_p11 }
  0x15   : > { %891 = dma.hbm_to_vmem [thread:$0]  (!%p889_p12), %s203_s11, 1536, %s205_s13, [#allocation3], %s1074_s14, %s1074_s14, %s1075_s15  }
  0x17   : > { %1046 = dma.done.wait (%p899_p9), [#allocation3], 1536  }
  0x18   : > { %1048 = vsyncadd (%p899_p9), [#allocation3], 4294965760  ;;  %p272_p13 = scmp.lt.s32.totalorder %s1136_s25, 1  ;;  %v866_v0 = vld [vmem:[#allocation2 + $0x38] sm:$0xff]  ;;  %v865_v2 = vld [vmem:[#allocation2 + $0x30] sm:$0xff]  ;;  %vm385_vm0 = vcmask 523264   ;;  %v429_v29 = vlaneseq  ;;  %s625_s13 = scalar_lea.hbm %s1286_s5, %s1136_s25 }
  0x19   : > { %v870_v1 = vld [vmem:[#allocation2 + $0x58] sm:$0xff]  ;;  %389 = vmatpush.bf16.msra.mxu0 %v866_v0  ;;  %v869_v3 = vld [vmem:[#allocation2 + $0x50] sm:$0xff]  ;;  %v864_v4 = vld [vmem:[#allocation2 + $0x28] sm:$0xff]  ;;  %vm562_vm7 = vcmask 130048   ;;  %s1220_s9 = sand.u32 1, %s1063_s22   ;;  %vm609_vm11 = vcmask 122880  }
  0x1a   : > { %s273_s16 = scalar_select %p272_p13, %s1136_s25, 1  ;;  %407 = vmatpush.bf16.msra.mxu1 %v870_v1  ;;  %v868_v5 = vld [vmem:[#allocation2 + $0x48] sm:$0xff]  ;;  %v863_v6 = vld [vmem:[#allocation2 + $0x20] sm:$0xff]  ;;  %v862_v10 = vld [vmem:[#allocation2 + $0x18] sm:$0xff]  ;;  %v1181_v30 = vand.u32 127, %v429_v29  ;;  %v1209_v61 = vshrl.u32 %v429_v29, 7 }
  0x1b   : > { %v867_v7 = vld [vmem:[#allocation2 + $0x40] sm:$0xff]  ;;  %v861_v12 = vld [vmem:[#allocation2 + $0x10] sm:$0xff]  ;;  %v860_v13 = vld [vmem:[#allocation2 + $0x8] sm:$0xff]  ;;  %s264_s10 = scalar_lea.vmem [#allocation5], %s1220_s9  ;;  %s629_s15 = sshll.u32 %s625_s13, 4  ;;  %s630_s15 = int_to_ptr.hbm [resolvable:$true] %s629_s15 }
  0x1c   : > { %s856_s17 = sshll.u32 %s273_s16, 4  ;;  %v859_v14 = vld [vmem:[#allocation2] sm:$0xff]  ;;  %v878_v39 = vld [vmem:[%s1284_s3 + $0x38] sm:$0xff]  ;;  %v877_v40 = vld [vmem:[%s1284_s3 + $0x30] sm:$0xff]  ;;  %v552_v62 = vadd.s32 8, %v1209_v61  ;;  %vm596_vm5 = vcmp.eq.s32.totalorder %v1209_v61, %v1181_v30  ;;  %s627_s14 = sshll.u32 %s264_s10, 4  ;;  %s628_s14 = int_to_ptr.vmem [resolvable:$true] %s627_s14 }
  0x1d   : > { %390 = vmatpush.bf16.msra.mxu0 %v865_v2  ;;  %s276_s20 = scalar_lea.vmem %s1281_s0, %s856_s17  ;;  %v941_v21 = vld [vmem:[%s1283_s2] ss:$0 sm:$0xff]  ;;  %536 = vmatpush.bf16.msra.mxu2 %v878_v39  ;;  %v876_v41 = vld [vmem:[%s1284_s3 + $0x28] sm:$0xff]  ;;  %v874_v51 = vld [vmem:[%s1284_s3 + $0x18] sm:$0xff]  ;;  %s612_s16 = scalar_lea.sflag [#allocation4], %s1220_s9 }
  0x1e   : > { %408 = vmatpush.bf16.msra.mxu1 %v869_v3  ;;  %v857_v8 = vld [vmem:[%s276_s20 + $0x4] sm:$0xf]  ;;  %v759_v9 = vld [vmem:[%s276_s20 + $0x8] sm:$0xf0]  ;;  %v757_v15 = vld [vmem:[%s276_s20] sm:$0xf]  ;;  %vm597_vm6 = vcmp.eq.s32.totalorder %v552_v62, %v1181_v30 }
  0x1f   : > { %v762_v11 = vor.u32 %v857_v8, %v759_v9  ;;  %v858_v16 = vld [vmem:[%s276_s20 + $0x4] sm:$0xf0]  ;;  %v875_v42 = vld [vmem:[%s1284_s3 + $0x20] sm:$0xff]  ;;  %v873_v52 = vld [vmem:[%s1284_s3 + $0x10] sm:$0xff]  ;;  %v1076_v9 = vmov 1.0|1.0  }
  0x20   : > { %v758_v17 = vor.u32 %v858_v16, %v757_v15  ;;  %v872_v53 = vld [vmem:[%s1284_s3 + $0x8] sm:$0xff]  ;;  %v871_v54 = vld [vmem:[%s1284_s3] sm:$0xff]  ;;  %s987_s17 = sshra.s32 %s630_s15, 4  ;;  %s993_s26 = scalar_lea.hbm %s1286_s5, 2  ;;  %s988_s17 = int_to_ptr.hbm [resolvable:$true] %s987_s17 }
  0x21   : > { %391 = vmatpush.bf16.msra.mxu0 %v864_v4  ;;  %537 = vmatpush.bf16.msra.mxu2 %v877_v40  ;;  %s989_s18 = scalar_lea.hbm %s988_s17, 1  ;;  %p994_p3 = scmp.lt.s32.totalorder %s988_s17, %s1286_s5 }
  0x22   : > { %409 = vmatpush.bf16.msra.mxu1 %v868_v5  ;;  %p990_p0 = scmp.ne.s32.totalorder %s988_s17, %s989_s18  ;;  %p995_p4 = scmp.lt.s32.totalorder %s993_s26, %s989_s18 }
  0x24   : > { %p991_p1 = pnand %p990_p0, %p1153_p5  ;;  %p996_p7 = por %p995_p4, %p994_p3 }
  0x25   : > { %392 = vmatpush.bf16.msra.mxu0 %v863_v6  ;;  %538 = vmatpush.bf16.msra.mxu2 %v876_v41 }
  0x26   : > { %410 = vmatpush.bf16.msra.mxu1 %v867_v7  ;;  %p992_p2 = pneg %p991_p1 }
  0x28   : > { %p997_p8 = pnand %p996_p7, %p992_p2 }
  0x29   : > { %393 = vmatpush.bf16.msra.mxu0 %v862_v10  ;;  %811 = vmatmul.msk.bf16.vlgmr.msra.gmra.mxu1 %vm385_vm0, %v762_v11 }
  0x2a   : > { %539 = vmatpush.bf16.msra.mxu2 %v875_v42 }
  0x2d   : > { %394 = vmatpush.bf16.msra.mxu0 %v861_v12 }
  0x2e   : > { %540 = vmatpush.bf16.msra.mxu2 %v874_v51 }
  0x31   : > { %395 = vmatpush.bf16.msra.mxu0 %v860_v13 }
  0x32   : > { %541 = vmatpush.bf16.msra.mxu2 %v873_v52 }
  0x35   : > { %396 = vmatpush.bf16.msra.mxu0 %v859_v14 }
  0x36   : > { %542 = vmatpush.bf16.msra.mxu2 %v872_v53 }
  0x38   : > { %397 = vmatmul.bf16.vlgmr.msra.gmra.mxu0 %v758_v17 }
  0x3a   : > { %543 = vmatpush.bf16.msra.mxu2 %v871_v54 }
  0xa6   : > { %v412_v18 = vpop.f32.mrf.mxu1 }
  0xae   : > { %v414_v24 = vpop.f32.mrf.mxu1 }
  0xb5   : > { %v398_v19 = vpop.f32.mrf.mxu0 }
  0xb6   : > { %v413_v20 = vadd.f32 %v412_v18, %v398_v19  ;;  %v553_v18 = vadd.s32 1, %v1181_v30  ;;  %v1077_v19 = vmov 0.0  }
  0xb8   : > { %v418_v22 = vmul.f32 2.0, %v413_v20  ;;  %vm554_vm12 = vcmp.eq.s32.totalorder %v1209_v61, %v553_v18  ;;  %vm555_vm13 = vcmp.eq.s32.totalorder %v552_v62, %v553_v18 }
  0xb9   : > { %v848_v20 = vsel %vm554_vm12, 1.0, %v1077_v19 }
  0xba   : > { %v423_v23 = vsub.f32 %v941_v21, %v418_v22 }
  0xbc   : > { %425 = vmin.xlane.f32.xlu0 %v423_v23 }
  0xbd   : > { %v400_v25 = vpop.f32.mrf.mxu0 }
  0xbe   : > { %v415_v26 = vadd.f32 %v414_v24, %v400_v25 }
  0xc0   : > { %v419_v27 = vmul.f32 2.0, %v415_v26 }
  0xc2   : > { %v424_v28 = vsub.f32 %v941_v21, %v419_v27  ;;  %v849_v21 = vsel %vm555_vm13, 1.0, %v1077_v19 }
  0xc3   : > { %v560_v24 = vpack.c.bf16 %v849_v21, %v848_v20 }
  0xc4   : > { %427 = vmin.xlane.f32.xlu0 %v424_v28 }
 0x12f   : > { %v426_v31 = vpop.xlane.xlu0 %425 }
 0x130   : > { %vm431_vm1 = vcmp.le.f32.partialorder %v423_v23, %v426_v31 }
 0x131   : > { %v433_v32 = vsel %vm431_vm1, %v1181_v30, 128 }
 0x132   : > { %v436_v33 = vshra.s32 %v433_v32, 16  ;;  %v435_v43 = vand.u32 65535, %v433_v32 }
 0x134   : > { %v438_v34 = vcvt.s32.f32 %v436_v33  ;;  %v437_v45 = vcvt.s32.f32 %v435_v43 }
 0x136   : > { %439 = vmin.xlane.f32.xlu1 %v438_v34 }
 0x137   : > { %v428_v35 = vpop.xlane.xlu0 %427 }
 0x138   : > { %vm432_vm2 = vcmp.le.f32.partialorder %v424_v28, %v428_v35 }
 0x139   : > { %v434_v36 = vsel %vm432_vm2, %v1181_v30, 128 }
 0x13a   : > { %v450_v37 = vshra.s32 %v434_v36, 16  ;;  %v449_v47 = vand.u32 65535, %v434_v36 }
 0x13c   : > { %v452_v38 = vcvt.s32.f32 %v450_v37  ;;  %v451_v49 = vcvt.s32.f32 %v449_v47 }
 0x13e   : > { %453 = vmin.xlane.f32.xlu1 %v452_v38 }
 0x1a9   : > { %v440_v44 = vpop.xlane.xlu1 %439 }
 0x1aa   : > { %vm441_vm3 = vcmp.eq.f32.partialorder %v438_v34, %v440_v44  ;;  %v446_v55 = vcvt.f32.s32 %v440_v44 }
 0x1ab   : > { %v442_v46 = vsel %vm441_vm3, %v437_v45, inf }
 0x1ac   : > { %443 = vmin.xlane.f32.xlu2 %v442_v46  ;;  %v447_v58 = vshll.u32 %v446_v55, 16 }
 0x1b1   : > { %v454_v48 = vpop.xlane.xlu1 %453 }
 0x1b2   : > { %vm455_vm4 = vcmp.eq.f32.partialorder %v452_v38, %v454_v48  ;;  %v460_v59 = vcvt.f32.s32 %v454_v48 }
 0x1b3   : > { %v456_v50 = vsel %vm455_vm4, %v451_v49, inf }
 0x1b4   : > { %457 = vmin.xlane.f32.xlu2 %v456_v50  ;;  %v461_v0 = vshll.u32 %v460_v59, 16 }
 0x21f   : > { %v444_v56 = vpop.xlane.xlu2 %443 }
 0x220   : > { %v445_v57 = vcvt.f32.s32 %v444_v56 }
 0x222   : > { %v448_v60 = vadd.s32 %v447_v58, %v445_v57 }
 0x224   : > { %v463_v1 = vadd.s32 2, %v448_v60 }
 0x226   : > { %v598_v5 = vsel %vm596_vm5, %v463_v1, 0  ;;  %vm465_vm8 = vcmp.eq.s32.totalorder %v1181_v30, %v463_v1 }
 0x227   : > { %v458_v63 = vpop.xlane.xlu2 %457  ;;  %v600_v7 = vsel %vm562_vm7, %v598_v5, 0 }
 0x228   : > { %v459_v2 = vcvt.f32.s32 %v458_v63 }
 0x22a   : > { %v462_v3 = vadd.s32 %v461_v0, %v459_v2 }
 0x22c   : > { %v464_v4 = vadd.s32 2, %v462_v3 }
 0x22e   : > { %v599_v6 = vsel %vm597_vm6, %v464_v4, 0  ;;  %vm466_vm9 = vcmp.eq.s32.totalorder %v1181_v30, %v464_v4 }
 0x22f   : > { %vm846_vm10 = vmpackc.low %vm466_vm9, %vm465_vm8  ;;  %v601_v8 = vsel %vm562_vm7, %v599_v6, 0 }
 0x230   : > { %847 = vmatmul.msk.bf16.vlgmr.msra.gmra.mxu2 %vm846_vm10, %v1076_v9  ;;  %v602_v10 = vadd.s32 %v601_v8, %v600_v7 }
 0x232   : > { %v603_v11 = vrot.slane %v602_v10, 4 }
 0x234   : > { %v604_v12 = vadd.s32 %v603_v11, %v602_v10 }
 0x236   : > { %v605_v13 = vrot.slane %v604_v12, 2 }
 0x238   : > { %v606_v14 = vadd.s32 %v605_v13, %v604_v12 }
 0x23a   : > { %v607_v15 = vrot.slane %v606_v14, 1 }
 0x23c   : > { %v608_v16 = vadd.s32 %v607_v15, %v606_v14 }
 0x23e   : > { %610 = vst.msk [vmem:[%s264_s10] sm:$0x1] %vm609_vm11, %v608_v16 }
 0x2b3   : > { %v545_v17 = vpop.f32.mrf.mxu2 }
 0x2bb   : > { %v547_v22 = vpop.f32.mrf.mxu2 }
 0x2bc   : > { %v561_v23 = vpack.c.bf16 %v547_v22, %v545_v17 }
 0x2be   : > { %573 = vmatpush.bf16.msra.mxu3 %v561_v23 }
 0x2c1   : > { %850 = vmatmul.msk.bf16.vlgmr.msra.gmra.mxu3 %vm562_vm7, %v560_v24 }
 0x2c2   : > { %1000 = shalt.err (!%p997_p8)
}
 0x2c3   : > { %884 = dma.vmem_to_hbm [thread:$0]  (%p1153_p5), %s628_s14, 16, %s630_s15, %s612_s16   ;;  %v580_v25 = vld [vmem:[%s1284_s3] sm:$0x1]  ;;  %vm582_vm14 = vcmp.eq.s32.totalorder %v1209_v61, 0  ;;  %vm593_vm15 = vcmask 261120  }
 0x2c4   : > { %v581_v26 = vunpack.c.l.bf16 %v580_v25  ;;  %s752_s12 = sshll.u32 %s1220_s9, 4  ;;  %v942_v28 = vld [vmem:[%s1285_s4] ss:$0 sm:$0xff]  ;;  %s879_s18 = sshll.u32 %s1136_s25, 4 }
 0x2c5   : > { %s640_s16 = scalar_lea.hbm %s1287_s6, %s879_s18  ;;  %s271_s19 = scalar_lea.vmem [#allocation6], %s752_s12 }
 0x2c6   : > { %v584_v27 = vperm.slane %v581_v26, 0  ;;  %s641_s20 = sshll.u32 %s271_s19, 4  ;;  %s643_s26 = sshll.u32 %s640_s16, 4  ;;  %s642_s20 = int_to_ptr.vmem [resolvable:$true] %s641_s20  ;;  %s644_s26 = int_to_ptr.hbm [resolvable:$true] %s643_s26 }
 0x2c7   : > { %s616_s28 = scalar_lea.sflag [#allocation7], %s1220_s9  ;;  %s1015_s29 = sshra.s32 %s644_s26, 4  ;;  %s1016_s29 = int_to_ptr.hbm [resolvable:$true] %s1015_s29 }
 0x2c8   : > { %s1017_s25 = scalar_lea.hbm %s1016_s29, 16  ;;  %s1021_s12 = scalar_lea.hbm %s1287_s6, 32 }
 0x2c9   : > { %p1018_p9 = scmp.ne.s32.totalorder %s1016_s29, %s1017_s25  ;;  %p1022_p12 = scmp.lt.s32.totalorder %s1016_s29, %s1287_s6 }
 0x2ca   : > { %p1023_p13 = scmp.lt.s32.totalorder %s1021_s12, %s1017_s25 }
 0x2cb   : > { %p1019_p10 = pnand %p1018_p9, %p1153_p5 }
 0x2cc   : > { %p1024_p0 = por %p1023_p13, %p1022_p12 }
 0x2cd   : > { %p1020_p11 = pneg %p1019_p10 }
 0x2cf   : > { %p1025_p1 = pnand %p1024_p0, %p1020_p11 }
 0x344   : > { %v575_v29 = vpop.f32.mrf.mxu3 }
 0x345   : > { %v585_v30 = vsel %vm582_vm14, %v584_v27, %v575_v29 }
 0x346   : > { %v591_v31 = vadd.f32 %v942_v28, %v585_v30 }
 0x348   : > { %594 = vst.msk [vmem:[%s271_s19] sm:$0xff] %vm593_vm15, %v591_v31 }
 0x34c   : > { %v577_v32 = vpop.f32.mrf.mxu3 }
 0x34d   : > { %v592_v33 = vadd.f32 %v942_v28, %v577_v32 }
 0x34f   : > { %595 = vst.msk [vmem:[%s271_s19 + $0x8] sm:$0xff] %vm593_vm15, %v592_v33 }
 0x350   : > { %1028 = shalt.err (!%p1025_p1)
}
 0x351   : > { %s1078_s9 = smov 128   ;;  %s1079_s18 = smov 8  }
 0x352   : > { %885 = dma.vmem_to_hbm [thread:$0]  (%p1153_p5), %s642_s20, 256, %s644_s26, %s616_s28, %s1078_s9, %s1078_s9, %s1079_s18  }
 0x353 PF: > { %p901_p2 = scmp.ge.s32.totalorder %s1071_s24, 2  ;;  %s658_s14 = sand.u32 1, %s1059_s21  }
 0x354   : > { %s659_s15 = scalar_lea.sflag [#allocation4], %s658_s14 }
 0x355   : > { %p893_p3 = pnand %p901_p2, %p1157_p6 }
 0x357   : > { %p894_p4 = pneg %p893_p3 }
 0x359   : > { %1050 = dma.done.wait (%p894_p4), %s659_s15, 16  }
 0x35a   : > { %1052 = vsyncadd (%p894_p4), %s659_s15, 4294967280  ;;  %s668_s16 = scalar_lea.sflag [#allocation7], %s658_s14 }
 0x35b   : > { %1054 = dma.done.wait (%p894_p4), %s668_s16, 256  }
 0x35c   : > { %1056 = vsyncadd (%p894_p4), %s668_s16, 4294967040  ;;  %p21_p5 = scmp.ge.s32.totalorder %s1140_s27, 4   ;;  %s1290_s21 = smov %s1063_s22 }
 0x35d   : > { %s1291_s22 = smov %s1067_s23  ;;  %s1292_s23 = smov %s1151_s30 }
 0x35e   : > { %s1293_s24 = smov %s1140_s27  ;;  %23 = sbr.rel (!%p21_p5) target bundleno = 6 (0x6), region = 97 }
 0x363   :  { %674 = vsyncpa [#allocation3], 1 }
 0x364   :  { %676 = vsyncpa [#allocation3 + $0x1], 1 }
 0x365   :  { %677 = vsyncpa [#allocation4], 1 }
 0x366   :  { %679 = vsyncpa [#allocation4 + $0x1], 1 }
 0x367   :  { %680 = vsyncpa [#allocation7], 1 }
 0x368   :  { %682 = vsyncpa [#allocation7 + $0x1], 1 }

</bundles_post_ra>
